<compile_context>
chip_gen: v7x
topology: tpu7x:2x2x1
jax: 0.10.0
libtpu: 0.0.40
codegen_flags: <defaults>
</compile_context>

<pallas_src>
import functools

import jax
import jax.numpy as jnp
from jax.experimental import pallas as pl
from jax.experimental.pallas import tpu as pltpu

_LANE = 128


def _sigmoid_approx_kernel(x_ref, o_ref):
    x = x_ref[...]                                   # f32 tile
    xc = jnp.clip(x, -4.0, 4.0)
    # 4.12 fixed point, all in f32: every intermediate is an integer-valued
    # float <= 2**24, so round/floor reproduce the int32 shifts bit-exactly.
    xf = jnp.round(jnp.abs(xc) * 4096.0)             # |round(xc*4096)| <= 16384
    z = jnp.floor(xf * 0.25) - 4096.0                # (|x_fixed| >> 2) - 4096
    tmp = jnp.floor(z * z * (1.0 / 8192.0))          # (z*z) >> 13  (<= 2048)
    y_fixed = jnp.where(xc <= 0.0, tmp, 4096.0 - tmp)
    y_approx = y_fixed * (1.0 / 4096.0)              # exact power-of-two scale
    o_ref[...] = jnp.where(x > 4.0, x, y_approx * xc)


def _choose_block_rows(rows, block_rows):
    """Pick a legal block-row count: big tiles, but >=2 grid steps for
    medium/large inputs (megacore + pipelining), multiple of 8 (or full)."""
    block_rows = max(8, (block_rows // 8) * 8)
    if rows <= 256:
        return rows                     # tiny: single full-extent block is fine
    if rows > block_rows:
        return block_rows               # big: stream block_rows-row tiles
    # Medium: fits in one block, but split into ~2 steps instead.
    half = pl.cdiv(rows, 2)
    return ((half + 7) // 8) * 8


@functools.partial(jax.jit, static_argnames=("block_rows",))
def sigmoid_approximation_pallas(x, *, block_rows=4096):
    """Elementwise sigmoid-approximation activation for any-shape input.

    Output is float32 (non-f32 inputs are promoted, matching the reference
    arithmetic which is defined on floats).
    """
    orig_shape = x.shape
    flat = x.reshape(-1).astype(jnp.float32)
    n = flat.shape[0]

    rows = pl.cdiv(n, _LANE)                 # static Python int under jit
    padded = rows * _LANE
    if padded != n:
        # TODO(synk): a fully copy-free ragged tail would need a scalar-prefetch
        # masked final store; zero-pad to a lane multiple keeps the layout
        # lane-dense and the pad region well-defined (no int converts anymore).
        flat = jnp.pad(flat, (0, padded - n))
    x2d = flat.reshape(rows, _LANE)

    br = _choose_block_rows(rows, block_rows)
    grid = (pl.cdiv(rows, br),)              # ragged last block masked by Pallas

    out2d = pl.pallas_call(
        _sigmoid_approx_kernel,
        out_shape=jax.ShapeDtypeStruct((rows, _LANE), jnp.float32),
        grid=grid,
        in_specs=[pl.BlockSpec((br, _LANE), lambda i: (i, 0))],
        out_specs=pl.BlockSpec((br, _LANE), lambda i: (i, 0)),
        compiler_params=pltpu.CompilerParams(
            dimension_semantics=("parallel",),
            vmem_limit_bytes=32 * 1024 * 1024,
        ),
        cost_estimate=pl.CostEstimate(
            flops=18 * padded, transcendentals=0, bytes_accessed=8 * padded),
    )(x2d)

    out_flat = out2d.reshape(-1)
    if padded != n:
        out_flat = out_flat[:n]
    return out_flat.reshape(orig_shape)


def _reference_jax(x):
    """Pure-JAX reference mirroring the PyTorch (int32) semantics exactly."""
    y = jnp.where(x > 4.0, x, 0.0)
    x_clipped = jnp.clip(x, -4.0, 4.0)
    x_fixed = jnp.round(x_clipped * 4096.0).astype(jnp.int32)
    z_fixed = jnp.where(x_clipped <= 0.0, -x_fixed, x_fixed)
    z = jnp.right_shift(z_fixed, 2) - 4096
    tmp = jnp.right_shift(jnp.right_shift(z * z, 12), 1)
    y_fixed = jnp.where(x_clipped <= 0.0, tmp, 4096 - tmp)
    y_approx = y_fixed.astype(jnp.float32) / 4096.0
    return y + jnp.where(x > 4.0, 0.0, y_approx * x_clipped)


if __name__ == "__main__":
    key = jax.random.PRNGKey(0)
    # NCHW input, small shape consistent with a conv-activation use site.
    x = jax.random.normal(key, (2, 4, 16, 16), dtype=jnp.float32) * 8.0
    out = jax.block_until_ready(sigmoid_approximation_pallas(x))
    ref = _reference_jax(x)
    assert out.shape == x.shape and out.dtype == jnp.float32
    assert jnp.allclose(out, ref, atol=1e-6, rtol=1e-6)

    # Documented scalar test vector from the PyTorch file (unaligned length,
    # exercises the partial-lane padding path).
    xv = jnp.array([-10, -4, -1.25, 0.0, 1.0, 4.0, 5.0, 8.0, 40.0, 60.0],
                   dtype=jnp.float32)
    outv = jax.block_until_ready(sigmoid_approximation_pallas(xv))
    assert jnp.allclose(outv, _reference_jax(xv), atol=1e-6, rtol=1e-6)

    # Larger unaligned case: rows > 256 so the wrapper forces a >=2-step grid.
    xl = jax.random.normal(jax.random.PRNGKey(1), (3, 7, 33, 65),
                           dtype=jnp.float32) * 8.0
    outl = jax.block_until_ready(sigmoid_approximation_pallas(xl))
    assert jnp.allclose(outl, _reference_jax(xl), atol=1e-6, rtol=1e-6)

    # Same tensor with a small block_rows to exercise the ragged-last-block,
    # multi-step grid path.
    outl2 = jax.block_until_ready(
        sigmoid_approximation_pallas(xl, block_rows=128))
    assert jnp.allclose(outl2, _reference_jax(xl), atol=1e-6, rtol=1e-6)

    print("KERNEL_OK")
</pallas_src>

<mosaic_0001>
module attributes {stable_mosaic.version = 11 : i64} {
  func.func @_sigmoid_approx_kernel(%arg0: i32, %arg1: memref<16x128xf32, #tpu.memory_space<vmem>>, %arg2: memref<16x128xf32, #tpu.memory_space<vmem>>) attributes {dimension_semantics = [#tpu.dimension_semantics<parallel>], iteration_bounds = array<i64: 1>, scalar_prefetch = 0 : i64, scratch_operands = 0 : i64, tpu.core_type = #tpu.core_type<tc>, window_params = [{transform_indices = @transform_0, window_bounds = array<i64: 16, 128>}, {transform_indices = @transform_1, window_bounds = array<i64: 16, 128>}]} {
    %c0 = arith.constant 0 : index
    %c0_0 = arith.constant 0 : index
    %0 = vector.load %arg1[%c0, %c0_0] : memref<16x128xf32, #tpu.memory_space<vmem>>, vector<16x128xf32>
    %cst = arith.constant -4.000000e+00 : f32
    %cst_1 = arith.constant 4.000000e+00 : f32
    %1 = vector.broadcast %cst : f32 to vector<16x128xf32>
    %2 = arith.maximumf %1, %0 : vector<16x128xf32>
    %3 = vector.broadcast %cst_1 : f32 to vector<16x128xf32>
    %4 = arith.minimumf %3, %2 : vector<16x128xf32>
    %5 = math.absf %4 : vector<16x128xf32>
    %cst_2 = arith.constant 4.096000e+03 : f32
    %6 = vector.broadcast %cst_2 : f32 to vector<16x128xf32>
    %7 = arith.mulf %5, %6 : vector<16x128xf32>
    %8 = math.roundeven %7 : vector<16x128xf32>
    %cst_3 = arith.constant 2.500000e-01 : f32
    %9 = vector.broadcast %cst_3 : f32 to vector<16x128xf32>
    %10 = arith.mulf %8, %9 : vector<16x128xf32>
    %11 = math.floor %10 : vector<16x128xf32>
    %cst_4 = arith.constant 4.096000e+03 : f32
    %12 = vector.broadcast %cst_4 : f32 to vector<16x128xf32>
    %13 = arith.subf %11, %12 : vector<16x128xf32>
    %14 = arith.mulf %13, %13 : vector<16x128xf32>
    %cst_5 = arith.constant 1.22070313E-4 : f32
    %15 = vector.broadcast %cst_5 : f32 to vector<16x128xf32>
    %16 = arith.mulf %14, %15 : vector<16x128xf32>
    %17 = math.floor %16 : vector<16x128xf32>
    %cst_6 = arith.constant 0.000000e+00 : f32
    %18 = vector.broadcast %cst_6 : f32 to vector<16x128xf32>
    %19 = arith.cmpf ole, %4, %18 : vector<16x128xf32>
    %cst_7 = arith.constant 4.096000e+03 : f32
    %20 = vector.broadcast %cst_7 : f32 to vector<16x128xf32>
    %21 = arith.subf %20, %17 : vector<16x128xf32>
    %22 = arith.select %19, %17, %21 : vector<16x128xi1>, vector<16x128xf32>
    %cst_8 = arith.constant 2.44140625E-4 : f32
    %23 = vector.broadcast %cst_8 : f32 to vector<16x128xf32>
    %24 = arith.mulf %22, %23 : vector<16x128xf32>
    %cst_9 = arith.constant 4.000000e+00 : f32
    %25 = vector.broadcast %cst_9 : f32 to vector<16x128xf32>
    %26 = arith.cmpf ogt, %0, %25 : vector<16x128xf32>
    %27 = arith.mulf %24, %4 : vector<16x128xf32>
    %28 = arith.select %26, %0, %27 : vector<16x128xi1>, vector<16x128xf32>
    %c0_10 = arith.constant 0 : index
    %c0_11 = arith.constant 0 : index
    %29 = vector.load %arg2[%c0_10, %c0_11] : memref<16x128xf32, #tpu.memory_space<vmem>>, vector<16x128xf32>
    tpu.vector_store %arg2[%c0_10, %c0_11], %28 {strides = array<i32>} : memref<16x128xf32, #tpu.memory_space<vmem>>, vector<16x128xf32>,
    return
  }
  func.func @transform_0(%arg0: i32) -> (i32, i32) {
    %c0_i32 = arith.constant 0 : i32
    %c0_i32_0 = arith.constant 0 : i32
    return %arg0, %c0_i32 : i32, i32
  }
  func.func @transform_1(%arg0: i32) -> (i32, i32) {
    %c0_i32 = arith.constant 0 : i32
    %c0_i32_0 = arith.constant 0 : i32
    return %arg0, %c0_i32 : i32, i32
  }
}

</mosaic_0001>

<bundles_post_ra>
// kernel: sigmoid_approximation_pallas.1
= control target key start
LH: loop header
LB: loop body
LE: loop exit
PB: predicated region body
PF: predicated region fallthrough
CT: control target
= control target key end

     0   :  { %s80_s0 = inlined_call_operand.vmem [shape: f32[16,128], index: 0, kind: input, shape index: {}]   ;;  %s81_s1 = inlined_call_operand.vmem [shape: f32[16,128], index: 1, kind: output, shape index: {}]  }
   0x1   :  { %v8_v0 = vld [vmem:[%s80_s0] sm:$0xff]  ;;  %v9_v1 = vld [vmem:[%s80_s0 + $0x8] sm:$0xff] }
   0x2   :  { %v52_v2 = vclamps-f32 %v8_v0, 4.0  ;;  %v53_v3 = vclamps-f32 %v9_v1, 4.0  ;;  %vm40_vm2 = vcmp.gt.f32.partialorder %v8_v0, 4.0  ;;  %vm41_vm3 = vcmp.gt.f32.partialorder %v9_v1, 4.0 }
   0x4   :  { %v14_v4 = vand.u32 2147483647, %v52_v2  ;;  %v15_v5 = vand.u32 2147483647, %v53_v3  ;;  %vm32_vm0 = vcmp.le.f32.partialorder %v52_v2, 0.0  ;;  %vm33_vm1 = vcmp.le.f32.partialorder %v53_v3, 0.0 }
   0x6   :  { %v16_v6 = vmul.f32 4096.0, %v14_v4  ;;  %v17_v7 = vmul.f32 4096.0, %v15_v5 }
   0x8   :  { %v56_v8 = vround.rtne.f32 %v16_v6  ;;  %v57_v9 = vround.rtne.f32 %v17_v7 }
   0xa   :  { %v20_v10 = vmul.f32 0.25, %v56_v8  ;;  %v21_v11 = vmul.f32 0.25, %v57_v9 }
   0xc   :  { %v22_v12 = vfloor.f32 %v20_v10  ;;  %v23_v13 = vfloor.f32 %v21_v11 }
   0xe   :  { %v54_v14 = vadd.f32 -4096.0, %v22_v12  ;;  %v55_v15 = vadd.f32 -4096.0, %v23_v13 }
  0x10   :  { %v26_v16 = vmul.f32 %v54_v14, %v54_v14  ;;  %v27_v17 = vmul.f32 %v55_v15, %v55_v15 }
  0x12   :  { %v28_v18 = vmul.f32 0.00012207031, %v26_v16  ;;  %v29_v19 = vmul.f32 0.00012207031, %v27_v17 }
  0x14   :  { %v30_v20 = vfloor.f32 %v28_v18  ;;  %v31_v21 = vfloor.f32 %v29_v19 }
  0x16   :  { %v34_v22 = vsub.f32 4096.0, %v30_v20  ;;  %v35_v23 = vsub.f32 4096.0, %v31_v21 }
  0x18   :  { %v36_v24 = vsel %vm32_vm0, %v30_v20, %v34_v22  ;;  %v37_v25 = vsel %vm33_vm1, %v31_v21, %v35_v23 }
  0x19   :  { %v38_v26 = vmul.f32 0.00024414063, %v36_v24  ;;  %v39_v27 = vmul.f32 0.00024414063, %v37_v25 }
  0x1b   :  { %v42_v28 = vmul.f32 %v52_v2, %v38_v26  ;;  %v43_v29 = vmul.f32 %v53_v3, %v39_v27 }
  0x1d   :  { %v44_v30 = vsel %vm40_vm2, %v8_v0, %v42_v28  ;;  %v45_v31 = vsel %vm41_vm3, %v9_v1, %v43_v29 }
  0x1e   :  { %46 = vst [vmem:[%s81_s1] sm:$0xff] %v44_v30  ;;  %47 = vst [vmem:[%s81_s1 + $0x8] sm:$0xff] %v45_v31 }

</bundles_post_ra>
